<compile_context>
chip_gen: v6e
topology: v6e:2x2x1
jax: 0.10.0
libtpu: 0.0.40
codegen_flags: <defaults>
</compile_context>

<pallas_src>
import functools

import jax
import jax.numpy as jnp
from jax import lax
from jax.experimental import pallas as pl
from jax.experimental.pallas import tpu as pltpu


def _focal_loss_kernel(logits_ref, tgt_ref, out_ref, *, gamma, n_valid, block_n):
    i = pl.program_id(0)

    # max / subtract in the input's native dtype (bf16 VPU on v6e/v7x);
    # only the shifted tile is upcast -> one live (bn, C) f32 temporary.
    x = logits_ref[...]                                        # (bn, C) native dtype
    m = jnp.max(x, axis=-1, keepdims=True)                     # (bn, 1)
    shifted = (logits_ref[...] - m).astype(jnp.float32)        # (bn, C) f32

    # numerically stable logsumexp over the class (lane) axis;
    # the full log_softmax is never materialized.
    lse = jnp.log(jnp.sum(jnp.exp(shifted), axis=-1, keepdims=True))  # (bn, 1)

    # gather the target's shifted logit with a select over an iota
    # (no f32 one-hot multiply -> fewer VALU ops per element).
    tgt = tgt_ref[...]                                         # (bn, 1) int32
    cls_idx = lax.broadcasted_iota(jnp.int32, shifted.shape, 1)
    tgt_shifted = jnp.sum(jnp.where(cls_idx == tgt, shifted, 0.0),
                          axis=-1, keepdims=True)              # (bn, 1)

    logp = lse - tgt_shifted                                   # per-row CE loss (bn, 1)

    # focal weighting, specialized at trace time on the static gamma
    if gamma == 0.0:
        loss = logp
    else:
        p = jnp.exp(-logp)
        w = 1.0 - p
        if float(gamma).is_integer() and 0 < gamma <= 4:
            f = w
            for _ in range(int(gamma) - 1):                    # integer pow -> VPU muls
                f = f * w
        else:
            # general float gamma; guard w == 0 (perfectly predicted sample)
            f = jnp.where(w > 0.0, jnp.exp(gamma * jnp.log(w)), 0.0)
        loss = f * logp

    # mask garbage rows of the (possibly partial) last tile with a select
    # (select does not propagate NaN/Inf from the unselected branch), then
    # reduce to a per-tile partial sum.
    row = lax.broadcasted_iota(jnp.int32, loss.shape, 0) + i * block_n
    masked = jnp.where(row < n_valid, loss, 0.0)               # (bn, 1)
    partial = jnp.sum(masked, axis=0, keepdims=True)           # (1, 1)

    # write the partial sum into row 0 of this tile's (8, 1) output block
    out_row = lax.broadcasted_iota(jnp.int32, out_ref.shape, 0)
    out_ref[...] = jnp.where(out_row == 0, partial, 0.0)


def _sublane_multiple(itemsize):
    # f32 -> 8, bf16 -> 16, int8/fp8 -> 32
    return 8 * max(1, 4 // itemsize)


def _pick_block_n(n_rows, c, itemsize, vmem_budget_bytes=20 * 1024 * 1024):
    """Largest batch tile whose real VMEM footprint fits the budget.

    Footprint per row ~= 2x double-buffered native-dtype input tile plus
    ~3 live (bn, C) f32 intermediates inside the kernel body.
    """
    sub = _sublane_multiple(itemsize)
    bytes_per_row = c * (2 * itemsize + 3 * 4) + 32
    bn = vmem_budget_bytes // max(1, bytes_per_row)
    bn = max(sub, min(1024, (bn // sub) * sub))
    # never exceed the (rounded-up) batch
    n_ceil = ((n_rows + sub - 1) // sub) * sub
    # keep >= 2 grid tiles whenever possible so v7x megacore can shard the axis
    half = ((pl.cdiv(n_rows, 2) + sub - 1) // sub) * sub
    return min(bn, n_ceil, max(sub, half))


def focal_loss(logits, targets, gamma=0.0, eps=1e-07, block_n=None):
    """logits: (N, C) float (f32 or bf16), targets: (N,) int. Scalar mean focal loss."""
    del eps  # unused in the reference forward pass (CrossEntropyLoss path)
    n, c = logits.shape
    itemsize = jnp.dtype(logits.dtype).itemsize
    sub = _sublane_multiple(itemsize)

    # Degenerate tiny-batch corner only: a block can't be smaller than one
    # sublane tile, so pad up to a single minimal tile (negligible cost).
    if n < sub:
        logits = jnp.pad(logits, ((0, sub - n), (0, 0)))
        targets = jnp.pad(targets, ((0, sub - n),))
    n_rows = logits.shape[0]

    if block_n is None:
        block_n = _pick_block_n(n_rows, c, itemsize)

    num_tiles = pl.cdiv(n_rows, block_n)
    tgt2d = targets.astype(jnp.int32).reshape(n_rows, 1)

    kernel = functools.partial(
        _focal_loss_kernel, gamma=float(gamma), n_valid=n, block_n=block_n
    )

    cost = pl.CostEstimate(
        flops=8 * n * c,                              # ~per-element VPU work
        transcendentals=n * c + 4 * n,                # exp over the tile + per-row exp/log
        bytes_accessed=n * c * itemsize + n * 4 + 8 * num_tiles * 4,
    )

    per_tile = pl.pallas_call(
        kernel,
        out_shape=jax.ShapeDtypeStruct((8 * num_tiles, 1), jnp.float32),
        grid_spec=pltpu.PrefetchScalarGridSpec(
            num_scalar_prefetch=0,
            grid=(num_tiles,),
            in_specs=[
                pl.BlockSpec((block_n, c), lambda i: (i, 0)),   # partial last block OK
                pl.BlockSpec((block_n, 1), lambda i: (i, 0)),
            ],
            out_specs=pl.BlockSpec((8, 1), lambda i: (i, 0)),
        ),
        compiler_params=pltpu.CompilerParams(
            # each tile writes its own output block -> no cross-step dependence,
            # so the batch axis can be sharded across TensorCores (v7x megacore)
            dimension_semantics=("parallel",),
            vmem_limit_bytes=32 * 1024 * 1024,
        ),
        cost_estimate=cost,
    )(logits, tgt2d)

    # per-tile partial sums of masked rows -> tiny final reduction outside
    return jnp.sum(per_tile) / n


def focal_loss_ref(logits, targets, gamma=0.0):
    # pure-JAX reference mirroring the PyTorch module
    logsm = jax.nn.log_softmax(logits.astype(jnp.float32), axis=-1)
    logp = -jnp.take_along_axis(
        logsm, targets[:, None].astype(jnp.int32), axis=-1
    )[:, 0]
    p = jnp.exp(-logp)
    return jnp.mean((1.0 - p) ** gamma * logp)


if __name__ == "__main__":
    key = jax.random.PRNGKey(0)
    k_logits, k_tgt = jax.random.split(key)

    N, C = 12, 32  # N not a multiple of the tile -> exercises the partial last block
    logits = jax.random.normal(k_logits, (N, C), dtype=jnp.float32)
    targets = jax.random.randint(k_tgt, (N,), 0, C, dtype=jnp.int32)

    # integer gamma (focal term via VPU multiplies)
    out = jax.block_until_ready(focal_loss(logits, targets, gamma=2.0))
    ref = focal_loss_ref(logits, targets, gamma=2.0)
    assert jnp.allclose(out, ref, rtol=1e-5, atol=1e-6), (out, ref)

    # gamma == 0 path (plain cross-entropy mean)
    out0 = jax.block_until_ready(focal_loss(logits, targets, gamma=0.0))
    ref0 = focal_loss_ref(logits, targets, gamma=0.0)
    assert jnp.allclose(out0, ref0, rtol=1e-5, atol=1e-6), (out0, ref0)

    # non-integer gamma (general, w>0-guarded exp/log path)
    outh = jax.block_until_ready(focal_loss(logits, targets, gamma=1.5))
    refh = focal_loss_ref(logits, targets, gamma=1.5)
    assert jnp.allclose(outh, refh, rtol=1e-4, atol=1e-6), (outh, refh)

    print("KERNEL_OK")
</pallas_src>

<mosaic_0001>
module attributes {stable_mosaic.version = 11 : i64} {
  func.func @_focal_loss_kernel(%arg0: i32, %arg1: memref<8x32xf32, #tpu.memory_space<vmem>>, %arg2: memref<8x1xi32, #tpu.memory_space<vmem>>, %arg3: memref<8x1xf32, #tpu.memory_space<vmem>>) attributes {dimension_semantics = [#tpu.dimension_semantics<parallel>], iteration_bounds = array<i64: 2>, scalar_prefetch = 0 : i64, scratch_operands = 0 : i64, tpu.core_type = #tpu.core_type<tc>, window_params = [{transform_indices = @transform_0, window_bounds = array<i64: 8, 32>}, {transform_indices = @transform_1, window_bounds = array<i64: 8, 1>}, {transform_indices = @transform_2, window_bounds = array<i64: 8, 1>}]} {
    %c0 = arith.constant 0 : index
    %c0_0 = arith.constant 0 : index
    %0 = vector.load %arg1[%c0, %c0_0] : memref<8x32xf32, #tpu.memory_space<vmem>>, vector<8x32xf32>
    %cst = arith.constant dense<0xFF800000> : vector<8xf32>
    %1 = vector.multi_reduction <maximumf>, %0, %cst [1] : vector<8x32xf32> to vector<8xf32>
    %2 = vector.shape_cast %1 : vector<8xf32> to vector<8x1xf32>
    %c0_1 = arith.constant 0 : index
    %c0_2 = arith.constant 0 : index
    %3 = vector.load %arg1[%c0_1, %c0_2] : memref<8x32xf32, #tpu.memory_space<vmem>>, vector<8x32xf32>
    %4 = vector.broadcast %2 : vector<8x1xf32> to vector<8x32xf32>
    %5 = arith.subf %3, %4 : vector<8x32xf32>
    %6 = math.exp %5 : vector<8x32xf32>
    %cst_3 = arith.constant dense<0.000000e+00> : vector<8xf32>
    %7 = vector.multi_reduction <add>, %6, %cst_3 [1] : vector<8x32xf32> to vector<8xf32>
    %8 = vector.shape_cast %7 : vector<8xf32> to vector<8x1xf32>
    %9 = math.log %8 : vector<8x1xf32>
    %c0_4 = arith.constant 0 : index
    %c0_5 = arith.constant 0 : index
    %10 = vector.load %arg2[%c0_4, %c0_5] : memref<8x1xi32, #tpu.memory_space<vmem>>, vector<8x1xi32>
    %11 = tpu.iota {dimensions = array<i32: 1>} : vector<8x32xi32>
    %12 = vector.broadcast %10 : vector<8x1xi32> to vector<8x32xi32>
    %13 = arith.cmpi eq, %11, %12 : vector<8x32xi32>
    %cst_6 = arith.constant 0.000000e+00 : f32
    %14 = vector.broadcast %cst_6 : f32 to vector<8x32xf32>
    %15 = arith.select %13, %5, %14 : vector<8x32xi1>, vector<8x32xf32>
    %cst_7 = arith.constant dense<0.000000e+00> : vector<8xf32>
    %16 = vector.multi_reduction <add>, %15, %cst_7 [1] : vector<8x32xf32> to vector<8xf32>
    %17 = vector.shape_cast %16 : vector<8xf32> to vector<8x1xf32>
    %18 = arith.subf %9, %17 : vector<8x1xf32>
    %cst_8 = arith.constant 0.000000e+00 : f32
    %19 = vector.broadcast %cst_8 : f32 to vector<8x1xf32>
    %20 = arith.subf %19, %18 : vector<8x1xf32>
    %21 = math.exp %20 : vector<8x1xf32>
    %cst_9 = arith.constant 1.000000e+00 : f32
    %22 = vector.broadcast %cst_9 : f32 to vector<8x1xf32>
    %23 = arith.subf %22, %21 : vector<8x1xf32>
    %24 = arith.mulf %23, %23 : vector<8x1xf32>
    %25 = arith.mulf %24, %18 : vector<8x1xf32>
    %26 = tpu.iota {dimensions = array<i32: 0>} : vector<8x1xi32>
    %c8_i32 = arith.constant 8 : i32
    %27 = arith.muli %arg0, %c8_i32 : i32
    %28 = vector.broadcast %27 : i32 to vector<8x1xi32>
    %29 = arith.addi %26, %28 : vector<8x1xi32>
    %c12_i32 = arith.constant 12 : i32
    %30 = vector.broadcast %c12_i32 : i32 to vector<8x1xi32>
    %31 = arith.cmpi slt, %29, %30 : vector<8x1xi32>
    %cst_10 = arith.constant 0.000000e+00 : f32
    %32 = vector.broadcast %cst_10 : f32 to vector<8x1xf32>
    %33 = arith.select %31, %25, %32 : vector<8x1xi1>, vector<8x1xf32>
    %cst_11 = arith.constant dense<0.000000e+00> : vector<1xf32>
    %34 = vector.multi_reduction <add>, %33, %cst_11 [0] : vector<8x1xf32> to vector<1xf32>
    %35 = vector.shape_cast %34 : vector<1xf32> to vector<1x1xf32>
    %36 = tpu.iota {dimensions = array<i32: 0>} : vector<8x1xi32>
    %c0_i32 = arith.constant 0 : i32
    %37 = vector.broadcast %c0_i32 : i32 to vector<8x1xi32>
    %38 = arith.cmpi eq, %36, %37 : vector<8x1xi32>
    %cst_12 = arith.constant 0.000000e+00 : f32
    %39 = vector.shape_cast %35 : vector<1x1xf32> to vector<1x1xf32>
    %40 = vector.broadcast %39 : vector<1x1xf32> to vector<8x1xf32>
    %41 = vector.broadcast %cst_12 : f32 to vector<8x1xf32>
    %42 = arith.select %38, %40, %41 : vector<8x1xi1>, vector<8x1xf32>
    %c0_13 = arith.constant 0 : index
    %c0_14 = arith.constant 0 : index
    %43 = vector.load %arg3[%c0_13, %c0_14] : memref<8x1xf32, #tpu.memory_space<vmem>>, vector<8x1xf32>
    tpu.vector_store %arg3[%c0_13, %c0_14], %42 {strides = array<i32>} : memref<8x1xf32, #tpu.memory_space<vmem>>, vector<8x1xf32>,
    return
  }
  func.func @transform_0(%arg0: i32) -> (i32, i32) {
    %c0_i32 = arith.constant 0 : i32
    %c0_i32_0 = arith.constant 0 : i32
    return %arg0, %c0_i32 : i32, i32
  }
  func.func @transform_1(%arg0: i32) -> (i32, i32) {
    %c0_i32 = arith.constant 0 : i32
    %c0_i32_0 = arith.constant 0 : i32
    return %arg0, %c0_i32 : i32, i32
  }
  func.func @transform_2(%arg0: i32) -> (i32, i32) {
    %c0_i32 = arith.constant 0 : i32
    %c0_i32_0 = arith.constant 0 : i32
    return %arg0, %c0_i32 : i32, i32
  }
}

</mosaic_0001>

<bundles_post_ra>
// kernel: tpu_custom_call.1
= control target key start
LH: loop header
LB: loop body
LE: loop exit
PB: predicated region body
PF: predicated region fallthrough
CT: control target
= control target key end

     0   :  { %s320_s9 = smov 0   ;;  %s353_s0 = inlined_call_operand.vmem [shape: f32[12,32], index: 0, kind: input, shape index: {}]   ;;  %s354_s1 = inlined_call_operand.vmem [shape: s32[12,1], index: 1, kind: input, shape index: {}]   ;;  %s355_s2 = inlined_call_operand.vmem [shape: f32[16,1], index: 2, kind: output, shape index: {}]  }
   0x1 LB: > { %s326_s10 = sadd.s32 4294967295, %s302_s9   ;;  %p273_p0 = scmp.ge.s32.totalorder %s302_s9, 1  ;;  %s302_s9 = sphi %s320_s9, %s12_s9  }
   0x2   : > { %p120_p1 = scmp.lt.s32.totalorder %s302_s9, 3 }
   0x4   : > { %p121_p2 = pnand %p273_p0, %p120_p1 }
   0x5   : > { %p144_p3 = scmp.lt.s32.totalorder (!%p121_p2), %s326_s10, 1  ;;  %s277_s19 = sshll.u32 (!%p121_p2), %s326_s10, 3 }
   0x6   : > { %124 = sbr.rel (%p121_p2) target bundleno = 369 (0x171), region = 28 }
   0xb   : > { %v304_v0 = vmov 0   ;;  %s145_s11 = scalar_select %p144_p3, %s326_s10, 1  ;;  %vm157_vm0 = vcmask 261120   ;;  %v170_v7 = vlaneseq  ;;  %v190_v22 = vstv %s277_s19 }
   0xc   : > { %289 = vset.pattern.permute.xlu0 %v304_v0  ;;  %vm202_vm4 = vcmask 7168  }
   0xd   : > { %s332_s12 = sshll.u32 %s145_s11, 3  ;;  %v171_v8 = vand.u32 127, %v170_v7  ;;  %v188_v21 = vshrl.u32 %v170_v7, 7 }
   0xe   : > { %s147_s15 = scalar_lea.vmem %s353_s0, %s332_s12  ;;  %s151_s18 = scalar_lea.vmem %s354_s1, %s332_s12 }
   0xf   : > { %v156_v1 = vld [vmem:[%s147_s15] sm:$0xff]  ;;  %v191_v24 = vadd.s32 %v190_v22, %v188_v21  ;;  %vm200_vm3 = vcmp.eq.s32.totalorder %v188_v21, 0  ;;  %s155_s22 = scalar_lea.vmem %s355_s2, %s332_s12 }
  0x10   : > { %v158_v2 = vsel %vm157_vm0, %v156_v1, -inf  ;;  %v169_v3 = vld [vmem:[%s151_s18] sm:$0xff] }
  0x11   : > { %159 = vmax.xlane.f32.xlu0 %v158_v2  ;;  %vm192_vm2 = vcmp.lt.s32.totalorder %v191_v24, 12 }
  0x27   : > { %173 = vperm.xlu0 %289, %v169_v3  }
  0x9a   : > { %v160_v4 = vpop.xlane.xlu0 %159 }
  0x9b   : > { %v161_v5 = vsub.f32 %v156_v1, %v160_v4 }
  0x9d   : > { %v162_v6 = vmul.f32 1.442695, %v161_v5 }
  0x9f   : > { %290 = vpow2.f32 %v162_v6 }
  0xa2   : > { %v174_v9 = vpop.permute.xlu0 %173 }
  0xa3   : > { %vm175_vm1 = vcmp.eq.s32.totalorder %v171_v8, %v174_v9 }
  0xa4   : > { %v176_v12 = vsel %vm175_vm1, %v161_v5, 0.0 }
  0xa5   : > { %v177_v13 = vsel %vm157_vm0, %v176_v12, 0.0 }
  0xac   : > { %v291_v10 = vpop.eup %290 }
  0xad   : > { %v164_v11 = vsel %vm157_vm0, %v291_v10, 0.0 }
  0xae   : > { %165 = vadd.xlane.f32.xlu1 %v164_v11 }
  0xb2   : > { %178 = vadd.xlane.f32.xlu1 %v177_v13 }
 0x137   : > { %v166_v14 = vpop.xlane.xlu1 %165 }
 0x138   : > { %292 = vlog2.f32 %v166_v14 }
 0x13b   : > { %v179_v17 = vpop.xlane.xlu1 %178 }
 0x145   : > { %v293_v15 = vpop.eup %292 }
 0x146   : > { %v168_v16 = vmul.f32 0.6931472, %v293_v15 }
 0x148   : > { %v180_v18 = vsub.f32 %v168_v16, %v179_v17 }
 0x14a   : > { %v181_v19 = vsub.f32 0.0, %v180_v18 }
 0x14c   : > { %v182_v20 = vmul.f32 1.442695, %v181_v19 }
 0x14e   : > { %294 = vpow2.f32 %v182_v20 }
 0x15b   : > { %v295_v23 = vpop.eup %294 }
 0x15c   : > { %v184_v25 = vsub.f32 1.0, %v295_v23 }
 0x15e   : > { %v185_v26 = vmul.f32 %v184_v25, %v184_v25 }
 0x160   : > { %v186_v27 = vmul.f32 %v185_v26, %v180_v18 }
 0x162   : > { %v193_v28 = vsel %vm192_vm2, %v186_v27, 0.0 }
 0x163   : > { %v194_v29 = vrot.slane %v193_v28, 4 }
 0x165   : > { %v195_v30 = vadd.f32 %v194_v29, %v193_v28 }
 0x167   : > { %v196_v31 = vrot.slane %v195_v30, 2 }
 0x169   : > { %v197_v32 = vadd.f32 %v196_v31, %v195_v30 }
 0x16b   : > { %v198_v33 = vrot.slane %v197_v32, 1 }
 0x16d   : > { %v199_v34 = vadd.f32 %v198_v33, %v197_v32 }
 0x16f   : > { %v201_v35 = vsel %vm200_vm3, %v199_v34, 0.0 }
 0x170   : > { %203 = vst.msk [vmem:[%s155_s22] sm:$0xff] %vm202_vm4, %v201_v35 }
 0x171 PF: > { %s12_s9 = sadd.s32 1, %s302_s9  }
 0x172   : > { %p9_p4 = scmp.ge.s32.totalorder %s12_s9, 4  }
 0x174   :  { %11 = sbr.rel (!%p9_p4) target bundleno = 1 (0x1), region = 61 }

</bundles_post_ra>
